<compile_context>
chip_gen: v7x
topology: tpu7x:2x2x1
jax: 0.10.0
libtpu: 0.0.40
codegen_flags: <defaults>
</compile_context>

<pallas_src>
import jax
import jax.numpy as jnp
from jax import lax
from jax.experimental import pallas as pl
from jax.experimental.pallas import tpu as pltpu


# ---------------------------------------------------------------------------
# Kernels
# ---------------------------------------------------------------------------
def _se_kernel(x_ref, w1t_ref, b1_ref, w2t_ref, b2_ref, o_ref):
    """Main path: whole (nb, C, L) batch tile resident; weights stay resident."""
    x = x_ref[...]                                     # (nb, C, L), native dtype
    nb, c, l = x.shape

    # Mean over L on the MXU: ones(nb,1,L) . x(nb,C,L) contracting L -> (nb,1,C),
    # f32 accumulation, no f32 copy of the whole tile is ever materialized.
    ones_row = jnp.ones((nb, 1, l), dtype=x.dtype)
    pooled = lax.dot_general(
        ones_row, x,
        dimension_numbers=(((2,), (2,)), ((0,), (0,))),
        preferred_element_type=jnp.float32,
    ).reshape(nb, c) * (1.0 / l)                       # (nb, C) f32

    h = jnp.maximum(
        jnp.dot(pooled, w1t_ref[...], preferred_element_type=jnp.float32)
        + b1_ref[...], 0.0)                            # (nb, Cr)
    g = jax.nn.sigmoid(
        jnp.dot(h, w2t_ref[...], preferred_element_type=jnp.float32)
        + b2_ref[...])                                 # (nb, C) f32

    # Gate applied in the input dtype (documented small numeric deviation for
    # sub-32-bit inputs vs. an all-f32 reference); tile re-read, not hoisted.
    o_ref[...] = x_ref[...] * g.astype(o_ref.dtype)[:, :, None]


def _se_pool_kernel(x_ref, s_ref):
    """Fallback pass 1: accumulate sum over L tiles.  x:(1,C,tl)  s:(1,1,C) f32."""
    @pl.when(pl.program_id(1) == 0)
    def _():
        s_ref[...] = jnp.zeros_like(s_ref)

    x = x_ref[...]
    ones_row = jnp.ones((1, 1, x.shape[2]), dtype=x.dtype)
    s_ref[...] += lax.dot_general(
        ones_row, x,
        dimension_numbers=(((2,), (2,)), ((0,), (0,))),
        preferred_element_type=jnp.float32)            # (1, 1, C)


def _se_scale_kernel(x_ref, g_ref, o_ref):
    """Fallback pass 2: broadcast-multiply.  x/o:(1,C,tl)  g:(1,C,1) input dtype."""
    o_ref[...] = x_ref[...] * g_ref[...]


# ---------------------------------------------------------------------------
# Sizing helpers
# ---------------------------------------------------------------------------
def _vmem_budgets(weight_bytes):
    """(vmem_limit_bytes, tile_budget_bytes) derived from the actual chip."""
    try:
        cap = int(pltpu.get_tpu_info().vmem_capacity_bytes)   # 128 MiB v5e/v6e, 64 MiB v7x
    except Exception:
        cap = 64 << 20                                        # conservative: fits all gens
    limit = (cap * 3) // 4                                    # headroom for compiler scratch
    budget = limit - 2 * weight_bytes - (4 << 20)             # weights (x2 buf) + slack
    return limit, max(budget, 1 << 20)


def _pick_batch_tile(N, row_bytes, budget, max_batch_tile):
    # Largest nb whose 2 input + 2 output double-buffered tiles fit the budget.
    nb = max(1, budget // (4 * row_bytes))
    # Keep the pipeline (and v7x's 2 TensorCores) busy: aim for >= min(N, 8) steps.
    nb = min(nb, pl.cdiv(N, min(N, 8)))
    if max_batch_tile is not None:
        nb = min(nb, max_batch_tile)
    nb = max(1, min(nb, N))
    while N % nb:                 # full blocks only (no masked edge steps)
        nb -= 1
    return nb


def _pick_l_tile(L, C, itemsize, budget):
    tl_max = min(L, max(1, budget // (4 * C * itemsize)))
    # Prefer lane-aligned tiles (multiple of 128) that divide L evenly.
    for tl in range(tl_max - tl_max % 128, 0, -128):
        if L % tl == 0:
            return tl
    # Otherwise largest divisor of L that fits (may be lane-misaligned; rare).
    for tl in range(tl_max, 0, -1):
        if L % tl == 0:
            return tl
    return 1


# ---------------------------------------------------------------------------
# Wrapper
# ---------------------------------------------------------------------------
def se_module(x, w1, b1, w2, b2, *, max_batch_tile=None,
              vmem_tile_budget_bytes=None):
    """x: (N, C, L); w1: (Cr, C); b1: (Cr,); w2: (C, Cr); b2: (C,)."""
    N, C, L = x.shape
    Cr = w1.shape[0]
    dt = x.dtype
    itemsize = jnp.dtype(dt).itemsize

    # Tiny once-per-call glue: weights pre-transposed for row-major MXU use.
    w1t = jnp.asarray(w1, jnp.float32).T               # (C, Cr)
    w2t = jnp.asarray(w2, jnp.float32).T               # (Cr, C)
    b1r = jnp.asarray(b1, jnp.float32).reshape(1, Cr)
    b2r = jnp.asarray(b2, jnp.float32).reshape(1, C)

    weight_bytes = 4 * (2 * C * Cr + Cr + C)
    vmem_limit, budget = _vmem_budgets(weight_bytes)
    if vmem_tile_budget_bytes is not None:              # test / override hook
        budget = min(budget, int(vmem_tile_budget_bytes))

    row_bytes = C * L * itemsize
    cparams = lambda sem: pltpu.CompilerParams(          # noqa: E731
        dimension_semantics=sem, vmem_limit_bytes=vmem_limit)

    # ---------------- main path: whole rows fit in VMEM ----------------
    if 4 * row_bytes <= budget:
        nb = _pick_batch_tile(N, row_bytes, budget, max_batch_tile)
        blk = (nb, C, L)
        return pl.pallas_call(
            _se_kernel,
            out_shape=jax.ShapeDtypeStruct((N, C, L), dt),
            grid=(N // nb,),
            in_specs=[
                pl.BlockSpec(blk, lambda i: (i, 0, 0)),     # x tile (streamed)
                pl.BlockSpec((C, Cr), lambda i: (0, 0)),    # weights: resident
                pl.BlockSpec((1, Cr), lambda i: (0, 0)),
                pl.BlockSpec((Cr, C), lambda i: (0, 0)),
                pl.BlockSpec((1, C), lambda i: (0, 0)),
            ],
            out_specs=pl.BlockSpec(blk, lambda i: (i, 0, 0)),
            compiler_params=cparams(("parallel",)),
        )(x, w1t, b1r, w2t, b2r)

    # ---------------- fallback: a single row does not fit --------------
    # Two passes over x (L-tiled): pool-accumulate, then scale.  Costs one
    # extra HBM read of x only in this regime.
    tl = _pick_l_tile(L, C, itemsize, budget)
    nl = L // tl

    sums = pl.pallas_call(
        _se_pool_kernel,
        out_shape=jax.ShapeDtypeStruct((N, 1, C), jnp.float32),
        grid=(N, nl),
        in_specs=[pl.BlockSpec((1, C, tl), lambda i, j: (i, 0, j))],
        out_specs=pl.BlockSpec((1, 1, C), lambda i, j: (i, 0, 0)),
        compiler_params=cparams(("parallel", "arbitrary")),
    )(x)

    # Gate: tiny (N, C) math, negligible next to streaming x — plain jnp is fine.
    pooled = sums[:, 0, :] * (1.0 / L)
    h = jnp.maximum(pooled @ w1t + b1r, 0.0)
    g = jax.nn.sigmoid(h @ w2t + b2r).astype(dt)[:, :, None]   # (N, C, 1)

    return pl.pallas_call(
        _se_scale_kernel,
        out_shape=jax.ShapeDtypeStruct((N, C, L), dt),
        grid=(N, nl),
        in_specs=[pl.BlockSpec((1, C, tl), lambda i, j: (i, 0, j)),
                  pl.BlockSpec((1, C, 1), lambda i, j: (i, 0, 0))],
        out_specs=pl.BlockSpec((1, C, tl), lambda i, j: (i, 0, j)),
        compiler_params=cparams(("parallel", "arbitrary")),
    )(x, g)


def se_reference(x, w1, b1, w2, b2):
    xf = jnp.asarray(x, jnp.float32)
    pooled = jnp.mean(xf, axis=-1)
    h = jnp.maximum(pooled @ jnp.asarray(w1, jnp.float32).T
                    + jnp.asarray(b1, jnp.float32), 0.0)
    g = jax.nn.sigmoid(h @ jnp.asarray(w2, jnp.float32).T
                       + jnp.asarray(b2, jnp.float32))
    return xf * g[:, :, None]


if __name__ == "__main__":
    key = jax.random.PRNGKey(0)
    kx, k1, kb1, k2, kb2, kx2 = jax.random.split(key, 6)

    # --- case 1: small shapes, f32, nb=1, grid=(N,) ---
    N, C, L, reduction = 4, 64, 16, 16
    Cr = C // reduction
    x = jax.random.normal(kx, (N, C, L), dtype=jnp.float32)
    w1 = jax.random.normal(k1, (Cr, C), dtype=jnp.float32) * 0.1
    b1 = jax.random.normal(kb1, (Cr,), dtype=jnp.float32) * 0.1
    w2 = jax.random.normal(k2, (C, Cr), dtype=jnp.float32) * 0.1
    b2 = jax.random.normal(kb2, (C,), dtype=jnp.float32) * 0.1

    ref = se_reference(x, w1, b1, w2, b2)
    out = jax.block_until_ready(se_module(x, w1, b1, w2, b2))
    assert jnp.allclose(out, ref, atol=1e-4, rtol=1e-4), "mismatch (main path, nb=1)"

    # --- case 2: larger batch, L=256, batch tile > 1 (multi-row blocks) ---
    x2 = jax.random.normal(kx2, (16, C, 256), dtype=jnp.float32)
    ref2 = se_reference(x2, w1, b1, w2, b2)
    out2 = jax.block_until_ready(se_module(x2, w1, b1, w2, b2))
    assert jnp.allclose(out2, ref2, atol=1e-4, rtol=1e-4), "mismatch (main path, nb>1)"

    # --- case 3: native bf16 streaming (gate math f32, multiply in bf16) ---
    xb = x.astype(jnp.bfloat16)
    refb = se_reference(xb, w1, b1, w2, b2)
    outb = jax.block_until_ready(se_module(xb, w1, b1, w2, b2))
    assert outb.dtype == jnp.bfloat16
    assert jnp.allclose(outb.astype(jnp.float32), refb, atol=5e-2, rtol=5e-2), \
        "mismatch (bf16 path)"

    # --- case 4: forced tiny tile budget -> L-tiled two-pass fallback ---
    x4 = jax.random.normal(kx2, (4, C, 256), dtype=jnp.float32)
    ref4 = se_reference(x4, w1, b1, w2, b2)
    out4 = jax.block_until_ready(
        se_module(x4, w1, b1, w2, b2, vmem_tile_budget_bytes=128 << 10))
    assert jnp.allclose(out4, ref4, atol=1e-4, rtol=1e-4), "mismatch (fallback path)"

    print("KERNEL_OK")
</pallas_src>

<mosaic_0001>
module attributes {stable_mosaic.version = 11 : i64} {
  func.func @_se_kernel(%arg0: i32, %arg1: memref<1x64x16xf32, #tpu.memory_space<vmem>>, %arg2: memref<64x4xf32, #tpu.memory_space<vmem>>, %arg3: memref<1x4xf32, #tpu.memory_space<vmem>>, %arg4: memref<4x64xf32, #tpu.memory_space<vmem>>, %arg5: memref<1x64xf32, #tpu.memory_space<vmem>>, %arg6: memref<1x64x16xf32, #tpu.memory_space<vmem>>) attributes {dimension_semantics = [#tpu.dimension_semantics<parallel>], iteration_bounds = array<i64: 4>, scalar_prefetch = 0 : i64, scratch_operands = 0 : i64, tpu.core_type = #tpu.core_type<tc>, window_params = [{transform_indices = @transform_0, window_bounds = array<i64: 1, 64, 16>}, {pipeline_mode = #tpu.pipeline_mode<synchronous>, transform_indices = @transform_1, window_bounds = array<i64: 64, 4>}, {pipeline_mode = #tpu.pipeline_mode<synchronous>, transform_indices = @transform_2, window_bounds = array<i64: 1, 4>}, {pipeline_mode = #tpu.pipeline_mode<synchronous>, transform_indices = @transform_3, window_bounds = array<i64: 4, 64>}, {pipeline_mode = #tpu.pipeline_mode<synchronous>, transform_indices = @transform_4, window_bounds = array<i64: 1, 64>}, {transform_indices = @transform_5, window_bounds = array<i64: 1, 64, 16>}]} {
    %c0 = arith.constant 0 : index
    %c0_0 = arith.constant 0 : index
    %c0_1 = arith.constant 0 : index
    %0 = vector.load %arg1[%c0, %c0_0, %c0_1] : memref<1x64x16xf32, #tpu.memory_space<vmem>>, vector<1x64x16xf32>
    %cst = arith.constant 1.000000e+00 : f32
    %1 = vector.broadcast %cst : f32 to vector<1x1x16xf32>
    %cst_2 = arith.constant dense<0.000000e+00> : vector<1x1x64xf32>
    %2 = tpu.matmul %1, %0, %cst_2 {dimension_numbers = #tpu.dot_dimension_numbers<[2], [2], [1], [1], [0, 0, 0, 1, 1, 1], [0], [0]>} : vector<1x1x16xf32>, vector<1x64x16xf32>, vector<1x1x64xf32> -> vector<1x1x64xf32>
    %3 = vector.shape_cast %2 : vector<1x1x64xf32> to vector<1x64xf32>
    %cst_3 = arith.constant 6.250000e-02 : f32
    %4 = vector.broadcast %cst_3 : f32 to vector<1x64xf32>
    %5 = arith.mulf %3, %4 : vector<1x64xf32>
    %c0_4 = arith.constant 0 : index
    %c0_5 = arith.constant 0 : index
    %6 = vector.load %arg2[%c0_4, %c0_5] : memref<64x4xf32, #tpu.memory_space<vmem>>, vector<64x4xf32>
    %cst_6 = arith.constant dense<0.000000e+00> : vector<1x4xf32>
    %7 = tpu.matmul %5, %6, %cst_6 {dimension_numbers = #tpu.dot_dimension_numbers<[1], [0], [0], [1], [0, 0, 1, 1], [], []>} : vector<1x64xf32>, vector<64x4xf32>, vector<1x4xf32> -> vector<1x4xf32>
    %c0_7 = arith.constant 0 : index
    %c0_8 = arith.constant 0 : index
    %8 = vector.load %arg3[%c0_7, %c0_8] : memref<1x4xf32, #tpu.memory_space<vmem>>, vector<1x4xf32>
    %9 = arith.addf %7, %8 : vector<1x4xf32>
    %cst_9 = arith.constant 0.000000e+00 : f32
    %10 = vector.broadcast %cst_9 : f32 to vector<1x4xf32>
    %11 = arith.maximumf %9, %10 : vector<1x4xf32>
    %c0_10 = arith.constant 0 : index
    %c0_11 = arith.constant 0 : index
    %12 = vector.load %arg4[%c0_10, %c0_11] : memref<4x64xf32, #tpu.memory_space<vmem>>, vector<4x64xf32>
    %cst_12 = arith.constant dense<0.000000e+00> : vector<1x64xf32>
    %13 = tpu.matmul %11, %12, %cst_12 {dimension_numbers = #tpu.dot_dimension_numbers<[1], [0], [0], [1], [0, 0, 1, 1], [], []>} : vector<1x4xf32>, vector<4x64xf32>, vector<1x64xf32> -> vector<1x64xf32>
    %c0_13 = arith.constant 0 : index
    %c0_14 = arith.constant 0 : index
    %14 = vector.load %arg5[%c0_13, %c0_14] : memref<1x64xf32, #tpu.memory_space<vmem>>, vector<1x64xf32>
    %15 = arith.addf %13, %14 : vector<1x64xf32>
    %16 = arith.negf %15 : vector<1x64xf32>
    %17 = math.exp %16 : vector<1x64xf32>
    %cst_15 = arith.constant 1.000000e+00 : f32
    %18 = vector.broadcast %cst_15 : f32 to vector<1x64xf32>
    %19 = arith.addf %18, %17 : vector<1x64xf32>
    %20 = arith.divf %18, %19 : vector<1x64xf32>
    %c0_16 = arith.constant 0 : index
    %c0_17 = arith.constant 0 : index
    %c0_18 = arith.constant 0 : index
    %21 = vector.load %arg1[%c0_16, %c0_17, %c0_18] : memref<1x64x16xf32, #tpu.memory_space<vmem>>, vector<1x64x16xf32>
    %22 = vector.shape_cast %20 : vector<1x64xf32> to vector<1x64x1xf32>
    %23 = vector.broadcast %22 : vector<1x64x1xf32> to vector<1x64x16xf32>
    %24 = arith.mulf %21, %23 : vector<1x64x16xf32>
    %c0_19 = arith.constant 0 : index
    %c0_20 = arith.constant 0 : index
    %c0_21 = arith.constant 0 : index
    %25 = vector.load %arg6[%c0_19, %c0_20, %c0_21] : memref<1x64x16xf32, #tpu.memory_space<vmem>>, vector<1x64x16xf32>
    tpu.vector_store %arg6[%c0_19, %c0_20, %c0_21], %24 {strides = array<i32>} : memref<1x64x16xf32, #tpu.memory_space<vmem>>, vector<1x64x16xf32>,
    return
  }
  func.func @transform_0(%arg0: i32) -> (i32, i32, i32) {
    %c0_i32 = arith.constant 0 : i32
    %c0_i32_0 = arith.constant 0 : i32
    %c0_i32_1 = arith.constant 0 : i32
    return %arg0, %c0_i32, %c0_i32_0 : i32, i32, i32
  }
  func.func @transform_1(%arg0: i32) -> (i32, i32) {
    %c0_i32 = arith.constant 0 : i32
    %c0_i32_0 = arith.constant 0 : i32
    %c0_i32_1 = arith.constant 0 : i32
    return %c0_i32, %c0_i32_0 : i32, i32
  }
  func.func @transform_2(%arg0: i32) -> (i32, i32) {
    %c0_i32 = arith.constant 0 : i32
    %c0_i32_0 = arith.constant 0 : i32
    %c0_i32_1 = arith.constant 0 : i32
    return %c0_i32, %c0_i32_0 : i32, i32
  }
  func.func @transform_3(%arg0: i32) -> (i32, i32) {
    %c0_i32 = arith.constant 0 : i32
    %c0_i32_0 = arith.constant 0 : i32
    %c0_i32_1 = arith.constant 0 : i32
    return %c0_i32, %c0_i32_0 : i32, i32
  }
  func.func @transform_4(%arg0: i32) -> (i32, i32) {
    %c0_i32 = arith.constant 0 : i32
    %c0_i32_0 = arith.constant 0 : i32
    %c0_i32_1 = arith.constant 0 : i32
    return %c0_i32, %c0_i32_0 : i32, i32
  }
  func.func @transform_5(%arg0: i32) -> (i32, i32, i32) {
    %c0_i32 = arith.constant 0 : i32
    %c0_i32_0 = arith.constant 0 : i32
    %c0_i32_1 = arith.constant 0 : i32
    return %arg0, %c0_i32, %c0_i32_0 : i32, i32, i32
  }
}

</mosaic_0001>

<bundles_post_ra>
// kernel: tpu_custom_call.1
= control target key start
LH: loop header
LB: loop body
LE: loop exit
PB: predicated region body
PF: predicated region fallthrough
CT: control target
= control target key end

     0   :  { %s783_s18 = smov 0   ;;  %s898_s0 = inlined_call_operand.vmem [shape: f32[4,64,16], index: 0, kind: input, shape index: {}]   ;;  %s899_s1 = inlined_call_operand.vmem [shape: f32[64,4], index: 1, kind: input, shape index: {}]   ;;  %s900_s2 = inlined_call_operand.vmem [shape: f32[1,4], index: 2, kind: input, shape index: {}]   ;;  %s901_s3 = inlined_call_operand.vmem [shape: f32[4,64], index: 3, kind: input, shape index: {}]   ;;  %s902_s4 = inlined_call_operand.vmem [shape: f32[1,64], index: 4, kind: input, shape index: {}]   ;;  %s903_s5 = inlined_call_operand.vmem [shape: f32[4,64,16], index: 5, kind: output, shape index: {}]  }
   0x1 LB: > { %s608_s19 = sadd.s32 4294967295, %s747_s18   ;;  %p612_p0 = scmp.ge.s32.totalorder %s747_s18, 1  ;;  %s747_s18 = sphi %s783_s18, %s15_s18  }
   0x2   : > { %p187_p1 = scmp.lt.s32.totalorder %s747_s18, 5 }
   0x4   : > { %p188_p2 = pnand %p612_p0, %p187_p1 }
   0x5   : > { %p215_p3 = scmp.lt.s32.totalorder (!%p188_p2), %s608_s19, 3  ;;  %v332_v0 = vld [vmem:[%s899_s1] sm:$0xff] (!%p188_p2)  ;;  %v749_v1 = vmov (!%p188_p2), 0.0|0.0   ;;  %vm750_vm0 = vmmov (!%p188_p2), 0   ;;  %v751_v2 = vmov (!%p188_p2), 0.0   ;;  %v333_v3 = vld [vmem:[%s899_s1 + $0x8] sm:$0xff] (!%p188_p2)  ;;  %v502_v44 = vlaneseq (!%p188_p2) }
   0x6   : > { %191 = sbr.rel (%p188_p2) target bundleno = 852 (0x354), region = 40  ;;  %697 = vmatprep.subr.bf16.mxu0 (!%p188_p2), %v749_v1  ;;  %670 = vmatprep.mubr.msk.f32.mxu0 (!%p188_p2), %vm750_vm0, %v751_v2  ;;  %v334_v4 = vld [vmem:[%s899_s1 + $0x10] sm:$0xff] (!%p188_p2)  ;;  %v714_v5 = vpack.c.bf16 (!%p188_p2), %v333_v3, %v332_v0  ;;  %v335_v6 = vld [vmem:[%s899_s1 + $0x18] sm:$0xff] (!%p188_p2)  ;;  %vm233_vm1 = vcmask (!%p188_p2), 130048   ;;  %v336_v8 = vld [vmem:[%s899_s1 + $0x20] sm:$0xff] (!%p188_p2)  ;;  %v752_v24 = vmov (!%p188_p2), 1.0  }
   0x7   : > { %713 = vmatprep.subr.bf16.mxu1 (!%p188_p2), %v749_v1  ;;  %689 = vmatprep.mubr.msk.f32.mxu1 (!%p188_p2), %vm750_vm0, %v751_v2  ;;  %v717_v7 = vpack.c.bf16 (!%p188_p2), %v335_v6, %v334_v4  ;;  %v337_v9 = vld [vmem:[%s899_s1 + $0x28] sm:$0xff] (!%p188_p2)  ;;  %vm825_vm2 = vmpackc.low (!%p188_p2), %vm233_vm1, %vm233_vm1  ;;  %v338_v25 = vld [vmem:[%s899_s1 + $0x30] sm:$0xff] (!%p188_p2)  ;;  %vm341_vm3 = vcmask (!%p188_p2), 523264   ;;  %vm422_vm4 = vcmask (!%p188_p2), 1043456   ;;  %vm418_vm5 = vcmask (!%p188_p2), 31744  }
   0x8   : > { %715 = vmatpush3.bf16.msra.mxu1 (!%p188_p2), %v714_v5  ;;  %v720_v14 = vpack.c.bf16 (!%p188_p2), %v337_v9, %v336_v8  ;;  %v339_v26 = vld [vmem:[%s899_s1 + $0x38] sm:$0xff] (!%p188_p2)  ;;  %v416_v31 = vld [vmem:[%s901_s3] sm:$0xf] (!%p188_p2)  ;;  %v503_v45 = vshrl.u32 (!%p188_p2), %v502_v44, 7 }
   0x9   : > { %716 = vmatprep.subr.bf16.mxu1 (!%p188_p2), %v749_v1  ;;  %v723_v27 = vpack.c.bf16 (!%p188_p2), %v339_v26, %v338_v25  ;;  %v340_v32 = vld [vmem:[%s900_s2] sm:$0x1] (!%p188_p2) }
   0xa   : > { %v417_v37 = vld [vmem:[%s902_s4] sm:$0x1] (!%p188_p2)  ;;  %v504_v46 = vsub.s32 (!%p188_p2), 0, %v503_v45 }
   0xc   : > { %718 = vmatpush3.bf16.msra.mxu1 (!%p188_p2), %v717_v7 }
   0xd   : > { %s907_s19 = smov (!%p215_p3, %s608_s19), 3  ;;  %719 = vmatprep.subr.bf16.mxu1 %v749_v1 }
   0xe   : > { %s632_s28 = sshll.u32 %s907_s19, 6 }
   0xf   : > { %s219_s6 = scalar_lea.vmem %s898_s0, %s632_s28  ;;  %s224_s25 = scalar_lea.vmem %s903_s5, %s632_s28 }
  0x10   : > { %v819_v10 = vld [vmem:[%s219_s6] sm:$0xff]  ;;  %v821_v11 = vld [vmem:[%s219_s6 + $0x8] sm:$0xff]  ;;  %v833_v15 = vld [vmem:[%s219_s6 + $0x10] sm:$0xff]  ;;  %721 = vmatpush3.bf16.msra.mxu1 %v720_v14 }
  0x11   : > { %v698_v13 = vpack.c.bf16 %v821_v11, %v819_v10  ;;  %v835_v16 = vld [vmem:[%s219_s6 + $0x18] sm:$0xff]  ;;  %722 = vmatprep.subr.bf16.mxu1 %v749_v1  ;;  %v841_v18 = vld [vmem:[%s219_s6 + $0x20] sm:$0xff]  ;;  %v843_v19 = vld [vmem:[%s219_s6 + $0x28] sm:$0xff] }
  0x12   : > { %v702_v17 = vpack.c.bf16 %v835_v16, %v833_v15  ;;  %v706_v20 = vpack.c.bf16 %v843_v19, %v841_v18  ;;  %v849_v21 = vld [vmem:[%s219_s6 + $0x30] sm:$0xff]  ;;  %v851_v22 = vld [vmem:[%s219_s6 + $0x38] sm:$0xff] }
  0x13   : > { %700 = vmatpush3.bf16.xpose.msk.msra.mxu0 %vm825_vm2, %v698_v13  ;;  %v710_v23 = vpack.c.bf16 %v851_v22, %v849_v21 }
  0x14   : > { %701 = vmatprep.subr.bf16.mxu0 %v749_v1  ;;  %724 = vmatpush3.bf16.msra.mxu1 %v723_v27 }
  0x15   : > { %692 = vmatprep.subr.mxu1 %v751_v2 }
  0x1b   : > { %704 = vmatpush3.bf16.xpose.msk.msra.mxu0 %vm825_vm2, %v702_v17 }
  0x1c   : > { %705 = vmatprep.subr.bf16.mxu0 %v749_v1 }
  0x23   : > { %708 = vmatpush3.bf16.xpose.msk.msra.mxu0 %vm825_vm2, %v706_v20 }
  0x24   : > { %709 = vmatprep.subr.bf16.mxu0 %v749_v1 }
  0x2b   : > { %712 = vmatpush3.bf16.xpose.msk.msra.mxu0 %vm825_vm2, %v710_v23 }
  0x32   : > { %671 = vmatmul.mubr.msk.f32.vlgmr.msra.gmra.mrb[0].mxu0 %vm233_vm1, %v752_v24 }
 0x105   : > { %v327_v28 = vpop.f32.mrb[0].mxu0 }
 0x106   : > { %v331_v29 = vmul.f32 0.0625, %v327_v28  ;;  %v672_v30 = vpop.f32.mrb[1].mxu0 }
 0x108   : > { %690 = vmatmul.mubr.msk.f32.vlgmr.msra.gmra.mrb[0].mxu1 %vm341_vm3, %v331_v29 }
 0x109   : > { %694 = vmatprep.mubr.msk.f32.mxu1 %vm750_vm0, %v751_v2  ;;  %693 = vmatpush3.msk.msra.mxu1 %vm422_vm4, %v416_v31 }
 0x1db   : > { %v411_v33 = vpop.f32.mrb[0].mxu1 }
 0x1dc   : > { %v412_v34 = vadd.f32 %v411_v33, %v340_v32  ;;  %v691_v35 = vpop.f32.mrb[1].mxu1 }
 0x1de   : > { %v415_v36 = vmax.f32 %v412_v34, 0.0 }
 0x1e0   : > { %695 = vmatmul.mubr.msk.f32.vlgmr.msra.gmra.mrb[2].mxu1 %vm418_vm5, %v415_v36 }
 0x2b3   : > { %v492_v38 = vpop.f32.mrb[2].mxu1 }
 0x2b4   : > { %v493_v39 = vadd.f32 %v492_v38, %v417_v37  ;;  %v696_v40 = vpop.f32.mrb[3].mxu1 }
 0x2b6   : > { %v629_v41 = vmul.f32 -1.442695, %v493_v39 }
 0x2b8   : > { %737 = vpow2.f32 %v629_v41 }
 0x2c2   : > { %v738_v42 = vpop.eup %737 }
 0x2c3   : > { %v499_v43 = vadd.f32 1.0, %v738_v42 }
 0x2c5   : > { %739 = vrcp.f32 %v499_v43 }
 0x2cf   : > { %v740_v47 = vpop.eup %739 }
 0x2d0   : > { %v505_v48 = vrot.slane %v740_v47, %v504_v46 }
 0x2d2   : > { %515 = vbcast.lane.b32.xlu1 %v505_v48, 272  ;;  %507 = vbcast.lane.b32.xlu0 %v505_v48, 256 }
 0x2d6   : > { %519 = vbcast.lane.b32.xlu1 %v505_v48, 280  ;;  %511 = vbcast.lane.b32.xlu0 %v505_v48, 264 }
 0x2da   : > { %527 = vbcast.lane.b32.xlu1 %v505_v48, 296  ;;  %523 = vbcast.lane.b32.xlu0 %v505_v48, 288 }
 0x2de   : > { %535 = vbcast.lane.b32.xlu1 %v505_v48, 312  ;;  %531 = vbcast.lane.b32.xlu0 %v505_v48, 304 }
 0x344   : > { %v516_v49 = vpop.permute.xlu1 %515  ;;  %v508_v50 = vpop.permute.xlu0 %507 }
 0x345   : > { %v539_v51 = vmul.f32 %v516_v49, %v833_v15  ;;  %v537_v52 = vmul.f32 %v508_v50, %v819_v10 }
 0x347   : > { %547 = vst.msk [vmem:[%s224_s25 + $0x10] sm:$0xff] %vm233_vm1, %v539_v51  ;;  %545 = vst.msk [vmem:[%s224_s25] sm:$0xff] %vm233_vm1, %v537_v52 }
 0x348   : > { %v520_v53 = vpop.permute.xlu1 %519  ;;  %v512_v54 = vpop.permute.xlu0 %511 }
 0x349   : > { %v540_v55 = vmul.f32 %v520_v53, %v835_v16  ;;  %v538_v56 = vmul.f32 %v512_v54, %v821_v11 }
 0x34b   : > { %548 = vst.msk [vmem:[%s224_s25 + $0x18] sm:$0xff] %vm233_vm1, %v540_v55  ;;  %546 = vst.msk [vmem:[%s224_s25 + $0x8] sm:$0xff] %vm233_vm1, %v538_v56 }
 0x34c   : > { %v528_v57 = vpop.permute.xlu1 %527  ;;  %v524_v58 = vpop.permute.xlu0 %523 }
 0x34d   : > { %v542_v59 = vmul.f32 %v528_v57, %v843_v19  ;;  %v541_v60 = vmul.f32 %v524_v58, %v841_v18 }
 0x34f   : > { %550 = vst.msk [vmem:[%s224_s25 + $0x28] sm:$0xff] %vm233_vm1, %v542_v59  ;;  %549 = vst.msk [vmem:[%s224_s25 + $0x20] sm:$0xff] %vm233_vm1, %v541_v60 }
 0x350   : > { %v536_v61 = vpop.permute.xlu1 %535  ;;  %v532_v62 = vpop.permute.xlu0 %531 }
 0x351   : > { %v544_v63 = vmul.f32 %v536_v61, %v851_v22  ;;  %v543_v0 = vmul.f32 %v532_v62, %v849_v21 }
 0x353   : > { %552 = vst.msk [vmem:[%s224_s25 + $0x38] sm:$0xff] %vm233_vm1, %v544_v63  ;;  %551 = vst.msk [vmem:[%s224_s25 + $0x30] sm:$0xff] %vm233_vm1, %v543_v0 }
 0x354 PF: > { %s15_s18 = sadd.s32 1, %s747_s18  }
 0x355   : > { %p12_p4 = scmp.ge.s32.totalorder %s15_s18, 6  }
 0x357   :  { %14 = sbr.rel (!%p12_p4) target bundleno = 1 (0x1), region = 70 }

</bundles_post_ra>
